<compile_context>
chip_gen: v6e
topology: v6e:2x2x1
jax: 0.10.0
libtpu: 0.0.40
codegen_flags: <defaults>
</compile_context>

<pallas_src>
import functools

import numpy as np
import jax
import jax.numpy as jnp
from jax.experimental import pallas as pl
from jax.experimental.pallas import tpu as pltpu

_SQRT2 = np.float32(np.sqrt(2.0))
_SUBLANE = 8


def _mpfourier_kernel(x_ref, fp_ref, o_ref, *, tm):
    # x_ref:  (n_x, 1) f32  -- whole x column, VMEM-resident across the grid.
    # fp_ref: (2, C)   f32  -- row 0 = freqs, row 1 = phases, VMEM-resident.
    # o_ref:  (tm, C)       -- output tile in x.dtype.
    start = pl.program_id(0) * tm
    if tm % _SUBLANE == 0:
        start = pl.multiple_of(start, _SUBLANE)
    xc = x_ref[pl.ds(start, tm), :]      # (tm, 1) aligned sublane slice (no DMA)
    f = fp_ref[0:1, :]                   # (1, C)
    p = fp_ref[1:2, :]                   # (1, C)
    # Outer product via broadcast (VPU), cos on the EUP, sqrt(2) scale + cast
    # fused into the store.
    y = jnp.cos(xc * f + p) * _SQRT2
    o_ref[...] = y.astype(o_ref.dtype)


def _choose_row_tile(n, c, cap):
    # Multiple of 8, bounded by a ~2 MiB f32 tile budget and by `cap` so that
    # larger batches still produce several grid steps (v7x 2-TC sharding).
    budget_rows = max(_SUBLANE,
                      ((2 * 1024 * 1024) // (4 * c)) // _SUBLANE * _SUBLANE)
    tm = min(cap, budget_rows)
    return n if n <= tm else tm          # small N: one block == full array dim


def mp_fourier(x, fp, *, row_tile=512):
    """x: (N,) float; fp: (2, C) f32 (freqs row 0, phases row 1) -> (N, C) in x.dtype."""
    assert row_tile % _SUBLANE == 0
    n = int(x.shape[0])
    c = int(fp.shape[1])
    out_dtype = x.dtype

    tm = _choose_row_tile(n, c, row_tile)
    grid_n = pl.cdiv(n, tm)
    n_x = grid_n * tm                    # x side-buffer rows (>= n, <= n + tm - 1)

    # Tiny prep (O(N) elements): f32 cast + column reshape, pad only the x
    # side-buffer so the in-kernel pl.ds slice never reads past the buffer.
    x2 = x.astype(jnp.float32).reshape(n, 1)
    if n_x > n:
        x2 = jnp.pad(x2, ((0, n_x - n), (0, 0)))

    out_bytes = jnp.dtype(out_dtype).itemsize
    cost = pl.CostEstimate(
        flops=3 * n * c,                 # mul + add + sqrt(2) scale per element
        transcendentals=n * c,           # one cos per element
        bytes_accessed=n_x * 4 + 2 * c * 4 + n * c * out_bytes,
    )

    return pl.pallas_call(
        functools.partial(_mpfourier_kernel, tm=tm),
        out_shape=jax.ShapeDtypeStruct((n, c), out_dtype),
        grid_spec=pltpu.PrefetchScalarGridSpec(
            num_scalar_prefetch=0,
            grid=(grid_n,),
            in_specs=[
                pl.BlockSpec((n_x, 1), lambda i: (0, 0)),   # whole x, resident
                pl.BlockSpec((2, c), lambda i: (0, 0)),     # freqs/phases, resident
            ],
            out_specs=pl.BlockSpec((tm, c), lambda i: (i, 0)),
        ),
        compiler_params=pltpu.CompilerParams(
            # Row axis is fully independent -> let the runtime shard it across
            # TensorCores.
            # TODO(synk): on v7x, if plain "parallel" does not split across the
            # two TCs, switch this axis to pltpu.CORE_PARALLEL.
            dimension_semantics=("parallel",),
        ),
        cost_estimate=cost,
    )(x2, fp)


class MPFourierPallas:
    """Mirror of the PyTorch MPFourier module (no learnable parameters)."""

    def __init__(self, num_channels, bandwidth=1, seed=0):
        # TODO(synk): buffers are drawn with jax.random; bit-exact parity with a
        # torch.manual_seed(0) checkpoint requires loading torch's buffers.
        kf, kp = jax.random.split(jax.random.PRNGKey(seed))
        self.freqs = (2.0 * np.pi * bandwidth
                      * jax.random.normal(kf, (num_channels,), jnp.float32))
        self.phases = (2.0 * np.pi
                       * jax.random.uniform(kp, (num_channels,), jnp.float32))
        # Hoisted per-call prep: fused f32 constant, one resident DMA per call.
        self._fp = jnp.stack([self.freqs, self.phases]).astype(jnp.float32)  # (2, C)

    def __call__(self, x, row_tile=512):
        return mp_fourier(x, self._fp, row_tile=row_tile)


def _reference(x, freqs, phases):
    y = (jnp.cos(jnp.outer(x.astype(jnp.float32), freqs.astype(jnp.float32))
                 + phases.astype(jnp.float32)) * np.sqrt(2.0))
    return y.astype(x.dtype)


if __name__ == "__main__":
    key = jax.random.PRNGKey(0)
    k_small, k_ragged = jax.random.split(key)

    # --- small, module-consistent case: batch=8 noise levels, 32 channels, bf16
    module = MPFourierPallas(32)
    x = jax.random.normal(k_small, (8,), jnp.bfloat16)
    y = jax.block_until_ready(module(x))
    ref = _reference(x, module.freqs, module.phases)
    assert y.shape == (8, 32)
    assert y.dtype == x.dtype
    np.testing.assert_allclose(np.asarray(y, np.float32),
                               np.asarray(ref, np.float32),
                               rtol=2e-2, atol=2e-2)

    # --- multi-tile + ragged-last-block path: N=50 (not a multiple of 8/16),
    #     C=192 (not a multiple of 128), f32, small row_tile to force grid=4.
    module2 = MPFourierPallas(192, seed=1)
    x2 = jax.random.normal(k_ragged, (50,), jnp.float32)
    y2 = jax.block_until_ready(mp_fourier(x2, module2._fp, row_tile=16))
    ref2 = _reference(x2, module2.freqs, module2.phases)
    assert y2.shape == (50, 192)
    assert y2.dtype == x2.dtype
    np.testing.assert_allclose(np.asarray(y2), np.asarray(ref2),
                               rtol=1e-4, atol=1e-4)

    print("KERNEL_OK")
</pallas_src>

<mosaic_0001>
module attributes {stable_mosaic.version = 11 : i64} {
  func.func @_mpfourier_kernel(%arg0: i32, %arg1: memref<8x1xf32, #tpu.memory_space<vmem>>, %arg2: memref<2x32xf32, #tpu.memory_space<vmem>>, %arg3: memref<8x32xbf16, #tpu.memory_space<vmem>>) attributes {dimension_semantics = [#tpu.dimension_semantics<parallel>], iteration_bounds = array<i64: 1>, scalar_prefetch = 0 : i64, scratch_operands = 0 : i64, tpu.core_type = #tpu.core_type<tc>, window_params = [{pipeline_mode = #tpu.pipeline_mode<synchronous>, transform_indices = @transform_0, window_bounds = array<i64: 8, 1>}, {pipeline_mode = #tpu.pipeline_mode<synchronous>, transform_indices = @transform_1, window_bounds = array<i64: 2, 32>}, {transform_indices = @transform_2, window_bounds = array<i64: 8, 32>}]} {
    %c8_i32 = arith.constant 8 : i32
    %0 = arith.muli %arg0, %c8_i32 : i32
    %1 = tpu.assume_multiple %0, 8 : i32
    %2 = arith.index_cast %1 : i32 to index
    %c0 = arith.constant 0 : index
    %3 = vector.load %arg1[%2, %c0] : memref<8x1xf32, #tpu.memory_space<vmem>>, vector<8x1xf32>
    %c0_0 = arith.constant 0 : index
    %c0_1 = arith.constant 0 : index
    %4 = vector.load %arg2[%c0_0, %c0_1] : memref<2x32xf32, #tpu.memory_space<vmem>>, vector<1x32xf32>
    %c1 = arith.constant 1 : index
    %c0_2 = arith.constant 0 : index
    %5 = vector.load %arg2[%c1, %c0_2] : memref<2x32xf32, #tpu.memory_space<vmem>>, vector<1x32xf32>
    %6 = vector.broadcast %3 : vector<8x1xf32> to vector<8x32xf32>
    %7 = vector.broadcast %4 : vector<1x32xf32> to vector<8x32xf32>
    %8 = arith.mulf %6, %7 : vector<8x32xf32>
    %9 = vector.broadcast %5 : vector<1x32xf32> to vector<8x32xf32>
    %10 = arith.addf %8, %9 : vector<8x32xf32>
    %11 = math.cos %10 : vector<8x32xf32>
    %cst = arith.constant 1.41421354 : f32
    %12 = vector.broadcast %cst : f32 to vector<8x32xf32>
    %13 = arith.mulf %11, %12 : vector<8x32xf32>
    %14 = arith.truncf %13 : vector<8x32xf32> to vector<8x32xbf16>
    %c0_3 = arith.constant 0 : index
    %c0_4 = arith.constant 0 : index
    %15 = vector.load %arg3[%c0_3, %c0_4] : memref<8x32xbf16, #tpu.memory_space<vmem>>, vector<8x32xbf16>
    tpu.vector_store %arg3[%c0_3, %c0_4], %14 {strides = array<i32>} : memref<8x32xbf16, #tpu.memory_space<vmem>>, vector<8x32xbf16>,
    return
  }
  func.func @transform_0(%arg0: i32) -> (i32, i32) {
    %c0_i32 = arith.constant 0 : i32
    %c0_i32_0 = arith.constant 0 : i32
    %c0_i32_1 = arith.constant 0 : i32
    return %c0_i32, %c0_i32_0 : i32, i32
  }
  func.func @transform_1(%arg0: i32) -> (i32, i32) {
    %c0_i32 = arith.constant 0 : i32
    %c0_i32_0 = arith.constant 0 : i32
    %c0_i32_1 = arith.constant 0 : i32
    return %c0_i32, %c0_i32_0 : i32, i32
  }
  func.func @transform_2(%arg0: i32) -> (i32, i32) {
    %c0_i32 = arith.constant 0 : i32
    %c0_i32_0 = arith.constant 0 : i32
    return %arg0, %c0_i32 : i32, i32
  }
}

</mosaic_0001>

<bundles_post_ra>
// kernel: tpu_custom_call.1
= control target key start
LH: loop header
LB: loop body
LE: loop exit
PB: predicated region body
PF: predicated region fallthrough
CT: control target
= control target key end

     0   :  { %v198_v1 = vmov 0   ;;  %s254_s0 = inlined_call_operand.vmem [shape: f32[8,1], index: 0, kind: input, shape index: {}]   ;;  %s255_s1 = inlined_call_operand.vmem [shape: f32[2,32], index: 1, kind: input, shape index: {}]   ;;  %s256_s2 = inlined_call_operand.hbm [shape: bf16[8,32], index: 2, kind: output, shape index: {}]  }
   0x1   :  { %v14_v0 = vld [vmem:[%s254_s0] sm:$0xff]  ;;  %171 = vset.pattern.permute.xlu0 %v198_v1 }
   0x2   :  { %19 = vperm.xlu0 %171, %v14_v0  }
   0x3   :  { %7 = vsyncpa [#allocation3], 0  ;;  %v153_v2 = vld [vmem:[%s255_s1] ss:$0 sm:$0xff]  ;;  %v154_v3 = vld [vmem:[%s255_s1 + $0x1] ss:$0 sm:$0xff] }
   0x4   :  { %v199_v17 = vmov 683565275   ;;  %v200_v19 = vmov 2475754826   ;;  %v201_v22 = vmov 2131351028  }
   0x5   :  { %v202_v25 = vmov 2102212464   ;;  %v203_v28 = vmov 920167782   ;;  %v204_v31 = vmov 1326507024  }
   0x6   :  { %s205_s0 = smov [#allocation2]   ;;  %vm137_vm13 = vcmask 257024  }
   0x7   :  { %s145_s1 = sshll.u32 %s205_s0, 4  ;;  %s146_s1 = int_to_ptr.vmem [resolvable:$true] %s145_s1 }
   0x8   :  { %s176_s15 = scalar_lea.vmem %s146_s1, 64  ;;  %p181_p1 = scmp.lt.s32.totalorder %s146_s1, %s146_s1 }
   0x9   :  { %p177_p0 = scmp.ne.s32.totalorder %s146_s1, %s176_s15  ;;  %p182_p2 = scmp.lt.s32.totalorder %s176_s15, %s176_s15 }
   0xb   :  { %p183_p3 = por %p182_p2, %p181_p1 }
   0xd   :  { %p184_p4 = pnand %p183_p3, %p177_p0 }
  0x7d   :  { %v20_v4 = vpop.permute.xlu0 %19 }
  0x7e   :  { %v26_v5 = vmul.f32 %v153_v2, %v20_v4 }
  0x80   :  { %v230_v6 = vadd.f32 %v154_v3, %v26_v5 }
  0x82   :  { %v35_v7 = vand.u32 2139095040, %v230_v6  ;;  %v32_v11 = vand.u32 2147483647, %v230_v6  ;;  %vm34_vm7 = vcmp.lt.s32.totalorder %v230_v6, 0  ;;  %vm124_vm12 = vweird.f32 %v230_v6 }
  0x84   :  { %v36_v8 = vshrl.u32 %v35_v7, 23  ;;  %v39_v14 = vand.u32 8388607, %v32_v11  ;;  %vm33_vm8 = vcmp.le.f32.partialorder %v32_v11, 0.7853982 }
  0x86   :  { %v155_v9 = vadd.s32 4294967169, %v36_v8  ;;  %v40_v33 = vor.u32 8388608, %v39_v14 }
  0x88   :  { %v42_v10 = vadd.s32 1, %v155_v9  ;;  %v80_v47 = vshll.u32 %v40_v33, 8 }
  0x8a   :  { %vm43_vm0 = vcmp.gt.s32.totalorder %v42_v10, 0 }
  0x8b   :  { %v44_v12 = vsel %vm43_vm0, %v42_v10, 0 }
  0x8c   :  { %v46_v13 = vand.u32 31, %v44_v12  ;;  %v45_v16 = vshrl.u32 %v44_v12, 5 }
  0x8e   :  { %v47_v15 = vsub.s32 32, %v46_v13  ;;  %v49_v18 = vshll.u32 %v199_v17, %v46_v13  ;;  %v52_v20 = vshll.u32 %v200_v19, %v46_v13  ;;  %v55_v24 = vshll.u32 %v201_v22, %v46_v13 }
  0x8f   :  { %v58_v27 = vshll.u32 %v202_v25, %v46_v13  ;;  %v61_v30 = vshll.u32 %v203_v28, %v46_v13  ;;  %vm64_vm1 = vcmp.lt.s32.totalorder %v45_v16, 1  ;;  %vm67_vm2 = vcmp.lt.s32.totalorder %v45_v16, 4 }
  0x90   :  { %v50_v21 = vshrl.u32 %v200_v19, %v47_v15  ;;  %v53_v23 = vshrl.u32 %v201_v22, %v47_v15  ;;  %v56_v26 = vshrl.u32 %v202_v25, %v47_v15  ;;  %v59_v29 = vshrl.u32 %v203_v28, %v47_v15 }
  0x91   :  { %v62_v32 = vshrl.u32 %v204_v31, %v47_v15  ;;  %v48_v42 = vshrl.u32 %v199_v17, %v47_v15  ;;  %vm66_vm3 = vcmp.lt.s32.totalorder %v45_v16, 3  ;;  %vm65_vm4 = vcmp.lt.s32.totalorder %v45_v16, 2 }
  0x92   :  { %v51_v34 = vor.u32 %v50_v21, %v49_v18  ;;  %v54_v35 = vor.u32 %v53_v23, %v52_v20  ;;  %v57_v36 = vor.u32 %v56_v26, %v55_v24  ;;  %v60_v37 = vor.u32 %v59_v29, %v58_v27 }
  0x93   :  { %v63_v38 = vor.u32 %v62_v32, %v61_v30 }
  0x94   :  { %v69_v39 = vsel %vm67_vm2, %v57_v36, 2102212464  ;;  %v72_v40 = vsel %vm64_vm1, %v51_v34, %v54_v35  ;;  %v76_v41 = vsel %vm64_vm1, %v54_v35, %v57_v36  ;;  %v73_v43 = vsel %vm67_vm2, %v60_v37, 920167782 }
  0x95   :  { %v77_v44 = vsel %vm67_vm2, %v63_v38, 1326507024  ;;  %v74_v45 = vsel %vm66_vm3, %v57_v36, %v73_v43  ;;  %v68_v48 = vsel %vm64_vm1, %v48_v42, %v51_v34  ;;  %v70_v49 = vsel %vm66_vm3, %v54_v35, %v69_v39 }
  0x96   :  { %v78_v46 = vsel %vm66_vm3, %v60_v37, %v77_v44  ;;  %v75_v50 = vsel %vm65_vm4, %v72_v40, %v74_v45  ;;  %v71_v56 = vsel %vm65_vm4, %v68_v48, %v70_v49 }
  0x97   :  { %v79_v51 = vsel %vm65_vm4, %v76_v41, %v78_v46  ;;  %v239_v54 = vmul.u32.u64.low %v80_v47, %v75_v50  ;;  %v240_v55 = vmul.u32.u64.high %v80_v47, %v75_v50, %v239_v54  ;;  %v87_v58 = vmul.u32 %v80_v47, %v71_v56 }
  0x98   :  { %v236_v52 = vmul.u32.u64.low %v80_v47, %v79_v51  ;;  %v237_v53 = vmul.u32.u64.high %v80_v47, %v79_v51, %v236_v52 }
  0x99   :  { %v90_v57 = vadd.s32 1, %v240_v55 }
  0x9a   :  { %vm89_vm5 = vc.u32 %v237_v53, %v239_v54  ;;  %v88_v7 = vadd.s32 %v239_v54, %v237_v53 }
  0x9b   :  { %v91_v59 = vsel %vm89_vm5, %v90_v57, %v240_v55 }
  0x9c   :  { %v92_v60 = vadd.s32 %v91_v59, %v87_v58 }
  0x9e   :  { %v93_v61 = vadd.s32 536870912, %v92_v60 }
  0xa0   :  { %v94_v62 = vshrl.u32 %v93_v61, 30 }
  0xa2   :  { %v95_v63 = vshll.u32 %v94_v62, 30  ;;  %v118_v23 = vsub.s32 4, %v94_v62 }
  0xa4   :  { %v96_v0 = vsub.s32 %v92_v60, %v95_v63  ;;  %v119_v24 = vsel %vm34_vm7, %v118_v23, %v94_v62 }
  0xa5   :  { %v121_v25 = vsel %vm33_vm8, 0, %v119_v24 }
  0xa6   :  { %v98_v1 = vsub.s32 0, %v96_v0  ;;  %v125_v26 = vand.u32 3, %v121_v25 }
  0xa8   :  { %v156_v2 = vmin.u32 %v98_v1, %v96_v0  ;;  %vm130_vm9 = vcmp.eq.s32.totalorder %v125_v26, 2  ;;  %vm127_vm10 = vcmp.eq.s32.totalorder %v125_v26, 0  ;;  %vm126_vm11 = vcmp.lt.s32.totalorder %v125_v26, 2 }
  0xaa   :  { %v100_v3 = vclz %v156_v2 }
  0xac   :  { %v157_v4 = vadd.s32 4294967294, %v100_v3 }
  0xae   :  { %vm158_vm6 = vcmp.lt.s32.totalorder %v157_v4, 0 }
  0xaf   :  { %v103_v5 = vsel %vm158_vm6, 0, %v157_v4 }
  0xb0   :  { %v104_v8 = vsub.s32 32, %v103_v5  ;;  %v108_v9 = vsub.s32 4294967266, %v103_v5  ;;  %v105_v10 = vshll.u32 %v96_v0, %v103_v5 }
  0xb2   :  { %v106_v12 = vshrl.u32 %v88_v7, %v104_v8  ;;  %v109_v13 = vadd.s32 127, %v108_v9 }
  0xb4   :  { %v107_v14 = vor.u32 %v106_v12, %v105_v10  ;;  %v110_v15 = vshll.u32 %v109_v13, 23 }
  0xb6   :  { %v111_v16 = vor.u32 4788187, %v110_v15  ;;  %v114_v18 = vcvt.s32.f32 %v107_v14 }
  0xb8   :  { %v112_v17 = vand.u32 2147483647, %v111_v16 }
  0xba   :  { %v115_v19 = vmul.f32 %v114_v18, %v112_v17 }
  0xbc   :  { %v116_v20 = vxor.u32 2147483648, %v115_v19 }
  0xbe   :  { %v117_v21 = vsel %vm34_vm7, %v116_v20, %v115_v19 }
  0xbf   :  { %v120_v22 = vsel %vm33_vm8, %v230_v6, %v117_v21 }
  0xc0   :  { %172 = vcosq.f32 %v120_v22 }
  0xc1   :  { %174 = vsinq.f32 %v120_v22 }
  0xcd   :  { %v173_v27 = vpop.eup %172 }
  0xce   :  { %v175_v28 = vpop.eup %174  ;;  %v131_v29 = vxor.u32 2147483648, %v173_v27 }
  0xcf   :  { %v128_v30 = vxor.u32 2147483648, %v175_v28 }
  0xd0   :  { %v132_v31 = vsel %vm130_vm9, %v131_v29, %v175_v28 }
  0xd1   :  { %v129_v32 = vsel %vm127_vm10, %v173_v27, %v128_v30 }
  0xd2   :  { %v133_v11 = vsel %vm126_vm11, %v129_v32, %v132_v31 }
  0xd3   :  { %v134_v33 = vsel %vm124_vm12, nan, %v133_v11 }
  0xd4   :  { %v135_v34 = vmul.f32 1.4142135, %v134_v33 }
  0xd6   :  { %v136_v35 = vpack.c.bf16 %v135_v34, %v135_v34 }
  0xd8   :  { %138 = vst.msk [vmem:[#allocation2] sm:$0xf] %vm137_vm13, %v136_v35 }
  0xd9   :  { %187 = shalt.err (!%p184_p4)
}
  0xda   :  { %148 = dma.vmem_to_hbm [thread:$0]  %s146_s1, 64, %s256_s2, [#allocation3]  }
  0xdb   :  { %196 = dma.done.wait [#allocation3], 64  }
  0xdc   :  { %197 = vsyncadd [#allocation3], 4294967232 }
  0xdd   :  { %152 = vsyncpa [#allocation3], 1 }

</bundles_post_ra>
